<compile_context>
chip_gen: v5e
topology: v5e:2x2
jax: 0.10.0
libtpu: 0.0.40
codegen_flags: <defaults>
</compile_context>

<pallas_src>
import functools
import math

import jax
import jax.numpy as jnp
from jax.experimental import pallas as pl
from jax.experimental.pallas import tpu as pltpu

# ---- small model config (consistent with the PyTorch module) ----
DIM = 32
N_HEADS = 4
N_KV_HEADS = 2
HEAD_DIM = DIM // N_HEADS            # 8
NUM_REP = N_HEADS // N_KV_HEADS      # 2
MAX_SEQ_LEN = 16
BATCH = 2
START_POS = 5
SEQ_LEN = 1

Q_W = N_HEADS * HEAD_DIM             # 32
KV_W = N_KV_HEADS * HEAD_DIM         # 16
QK_W = Q_W + KV_W                    # 48
QKV_W = Q_W + 2 * KV_W               # 64

NEG_INF = -1e30


def _round_up(v, m):
    return ((v + m - 1) // m) * m


def self_attention_kernel(x_ref, wqkv_ref, wo_ref, cos_ref, sin_ref, pswap_ref,
                          kc_in, vc_in,
                          out_ref, kc_out, vc_out,
                          k_buf, v_buf, sems,
                          *, start_pos, len_buf):
    """One grid step == one batch element (batch axis is 'parallel')."""
    b = pl.program_id(0)

    # ---- 1. kick off the KV-cache PREFIX reads (only the live rows [0, len_buf),
    #         not the whole cache); overlap them with the QKV projection + RoPE.
    rd_k = pltpu.make_async_copy(kc_in.at[b, pl.ds(0, len_buf), :], k_buf, sems.at[0])
    rd_v = pltpu.make_async_copy(vc_in.at[b, pl.ds(0, len_buf), :], v_buf, sems.at[1])
    rd_k.start()
    rd_v.start()

    # ---- 2. fused QKV projection: one matmul instead of three ----
    x = x_ref[...].reshape(1, DIM)                                            # (1, 32)
    qkv = jnp.dot(x, wqkv_ref[...], preferred_element_type=jnp.float32)       # (1, 64)

    # ---- 3. RoPE on the fused q|k slab (first 48 columns), single pass.
    # pair-swap permutation is a constant VMEM input (built once in the wrapper);
    # the per-column sign of sin is pre-baked in sin_ref ([-s,+s,-s,+s,...]).
    qk = qkv[:, :QK_W]                                                        # (1, 48)
    swapped = jnp.dot(qk, pswap_ref[...],
                      preferred_element_type=jnp.float32)                     # x[2i] <-> x[2i+1]
    qk_rot = qk * cos_ref[...] + swapped * sin_ref[...]

    inv_sqrt = 1.0 / math.sqrt(HEAD_DIM)
    xq = qk_rot[:, :Q_W] * inv_sqrt                   # (1, 32) score scale folded in once
    xk = qk_rot[:, Q_W:QK_W]                          # (1, 16)
    xv = qkv[:, QK_W:]                                # (1, 16)

    # ---- 4. KV-cache update: wait for the prefix read (it covers row start_pos),
    #         splice the new row with a direct store, then write back ONLY that row
    #         to the aliased HBM cache while the attention runs.
    rd_k.wait()
    rd_v.wait()
    k_buf[pl.ds(start_pos, 1), :] = xk
    v_buf[pl.ds(start_pos, 1), :] = xv
    wr_k = pltpu.make_async_copy(k_buf.at[pl.ds(start_pos, 1), :],
                                 kc_out.at[b, pl.ds(start_pos, 1), :], sems.at[2])
    wr_v = pltpu.make_async_copy(v_buf.at[pl.ds(start_pos, 1), :],
                                 vc_out.at[b, pl.ds(start_pos, 1), :], sems.at[3])
    wr_k.start()
    wr_v.start()

    # ---- 5. attention, grouped by KV head (no GQA expansion matmuls / head masks).
    pos = jax.lax.broadcasted_iota(jnp.int32, (1, len_buf), 1)
    neg = jnp.where(pos <= start_pos, 0.0, NEG_INF).astype(jnp.float32)       # (1, L)

    # scores: for each kv group g, contract its NUM_REP query heads against k_g.
    s_parts = []
    for g in range(N_KV_HEADS):
        k_g = k_buf[:, g * HEAD_DIM:(g + 1) * HEAD_DIM]                       # (L, hd)
        q_g = jnp.concatenate(
            [xq[:, (g * NUM_REP + r) * HEAD_DIM:(g * NUM_REP + r + 1) * HEAD_DIM]
             for r in range(NUM_REP)], axis=0)                                # (rep, hd)
        s_parts.append(jax.lax.dot_general(
            q_g, k_g, (((1,), (1,)), ((), ())),
            preferred_element_type=jnp.float32))                              # (rep, L)
    s = jnp.concatenate(s_parts, axis=0) + neg                                # (Hq, L)

    m = jnp.max(s, axis=-1, keepdims=True)
    e = jnp.exp(s - m)
    p = e * pl.reciprocal(jnp.sum(e, axis=-1, keepdims=True), approx=True)    # EUP recip

    # P @ V per kv group; emit per-head (1, hd) rows and lane-concat to (1, Hq*hd).
    o_parts = []
    for g in range(N_KV_HEADS):
        v_g = v_buf[:, g * HEAD_DIM:(g + 1) * HEAD_DIM]                       # (L, hd)
        p_g = p[g * NUM_REP:(g + 1) * NUM_REP, :]                             # (rep, L)
        o_g = jnp.dot(p_g, v_g, preferred_element_type=jnp.float32)           # (rep, hd)
        for r in range(NUM_REP):
            o_parts.append(o_g[r:r + 1, :])
    attn = jnp.concatenate(o_parts, axis=1)                                   # (1, 32)

    # ---- 6. output projection ----
    out = jnp.dot(attn, wo_ref[...], preferred_element_type=jnp.float32)      # (1, DIM)
    out_ref[...] = out.reshape(out_ref.shape)

    # the single-row cache writebacks must complete before this grid step ends
    wr_k.wait()
    wr_v.wait()


def self_attention_forward(x, start_pos, cos, sin, wq, wk, wv, wo, cache_k, cache_v):
    """x: (B, 1, DIM); start_pos: STATIC Python int; cos/sin: (1, HEAD_DIM//2) for
    position start_pos; wq/wk/wv/wo in PyTorch nn.Linear (out, in) layout;
    cache_{k,v}: (B, MAX_SEQ_LEN, N_KV_HEADS, HEAD_DIM)."""
    B = x.shape[0]
    assert x.shape[1] == 1, "single-token decode only"
    start_pos = int(start_pos)
    assert 0 <= start_pos < MAX_SEQ_LEN
    # live cache prefix (positions [0, start_pos]) rounded up to a full group of
    # 8 rows so the prefix DMA and the VMEM working copy stay sublane-aligned.
    len_buf = min(MAX_SEQ_LEN, _round_up(start_pos + 1, 8))

    x3 = x.reshape(B, 1, DIM)

    # fused QKV weight, (in, out) layout: (DIM, (Hq + 2*Hkv)*hd) = (32, 64)
    w_qkv = jnp.concatenate([wq.T, wk.T, wv.T], axis=1)

    # interleaved rotary coefficients for the concatenated q|k slab:
    #   cos: [c0,c0,c1,c1,...]   sin: [-s0,s0,-s1,s1,...]   tiled over (Hq + Hkv) heads
    cos_i = jnp.repeat(cos, 2, axis=-1)                                       # (1, hd)
    sin_i = jnp.stack([-sin, sin], axis=-1).reshape(1, HEAD_DIM)              # (1, hd)
    cos_qk = jnp.tile(cos_i, (1, N_HEADS + N_KV_HEADS))                       # (1, 48)
    sin_qk = jnp.tile(sin_i, (1, N_HEADS + N_KV_HEADS))                       # (1, 48)

    # constant adjacent-pair swap permutation (x[2i] <-> x[2i+1]) passed as a tiny
    # VMEM input (~9 KB) instead of being rebuilt from iota/compare/select per call.
    pair_swap = jnp.eye(QK_W, dtype=jnp.float32)[jnp.arange(QK_W) ^ 1]

    kc = cache_k.reshape(B, MAX_SEQ_LEN, KV_W)
    vc = cache_v.reshape(B, MAX_SEQ_LEN, KV_W)

    kernel = functools.partial(self_attention_kernel,
                               start_pos=start_pos, len_buf=len_buf)

    def vmem_full(shape):
        return pl.BlockSpec(shape, lambda b: (0,) * len(shape))

    hbm = pl.BlockSpec(memory_space=pl.ANY)        # caches stay in HBM; DMA'd manually

    out, kc_new, vc_new = pl.pallas_call(
        kernel,
        out_shape=(
            jax.ShapeDtypeStruct((B, 1, DIM), jnp.float32),
            jax.ShapeDtypeStruct((B, MAX_SEQ_LEN, KV_W), jnp.float32),
            jax.ShapeDtypeStruct((B, MAX_SEQ_LEN, KV_W), jnp.float32),
        ),
        grid=(B,),
        in_specs=[
            pl.BlockSpec((1, 1, DIM), lambda b: (b, 0, 0)),      # x (per-batch block)
            vmem_full((DIM, QKV_W)),                             # fused QKV weight
            vmem_full((Q_W, DIM)),                               # output projection
            vmem_full((1, QK_W)),                                # cos
            vmem_full((1, QK_W)),                                # sin (signed)
            vmem_full((QK_W, QK_W)),                             # pair-swap permutation
            hbm,                                                 # K cache (HBM)
            hbm,                                                 # V cache (HBM)
        ],
        out_specs=(
            pl.BlockSpec((1, 1, DIM), lambda b: (b, 0, 0)),
            hbm,
            hbm,
        ),
        scratch_shapes=[
            pltpu.VMEM((len_buf, KV_W), jnp.float32),            # K prefix working copy
            pltpu.VMEM((len_buf, KV_W), jnp.float32),            # V prefix working copy
            pltpu.SemaphoreType.DMA((4,)),
        ],
        # KV caches are updated in place: only the row at `start_pos` is written back.
        input_output_aliases={6: 1, 7: 2},
        compiler_params=pltpu.CompilerParams(
            dimension_semantics=("parallel",)),                  # 2 TCs on v7x
    )(x3, w_qkv, wo.T, cos_qk, sin_qk, pair_swap, kc, vc)

    return (out.reshape(B, SEQ_LEN, DIM),
            kc_new.reshape(B, MAX_SEQ_LEN, N_KV_HEADS, HEAD_DIM),
            vc_new.reshape(B, MAX_SEQ_LEN, N_KV_HEADS, HEAD_DIM))


# ---------- pure-JAX reference (mirrors the PyTorch forward) ----------
def reference_forward(x, start_pos, cos, sin, wq, wk, wv, wo, cache_k, cache_v):
    B, S, _ = x.shape
    xq = jnp.einsum('bsd,od->bso', x, wq).reshape(B, S, N_HEADS, HEAD_DIM)
    xk = jnp.einsum('bsd,od->bso', x, wk).reshape(B, S, N_KV_HEADS, HEAD_DIM)
    xv = jnp.einsum('bsd,od->bso', x, wv).reshape(B, S, N_KV_HEADS, HEAD_DIM)

    def rope_ref(v):
        vr, vi = v[..., 0::2], v[..., 1::2]
        c = cos[None, :, None, :]
        s = sin[None, :, None, :]
        return jnp.stack([vr * c - vi * s, vr * s + vi * c], axis=-1).reshape(v.shape)

    xq = rope_ref(xq)
    xk = rope_ref(xk)

    ck = cache_k.at[:, start_pos:start_pos + S].set(xk)
    cv = cache_v.at[:, start_pos:start_pos + S].set(xv)
    keys = jnp.repeat(ck[:, :start_pos + S], NUM_REP, axis=2)
    values = jnp.repeat(cv[:, :start_pos + S], NUM_REP, axis=2)
    q = xq.transpose(0, 2, 1, 3)
    k = keys.transpose(0, 2, 1, 3)
    v = values.transpose(0, 2, 1, 3)
    scores = jnp.einsum('bhqd,bhkd->bhqk', q, k) / math.sqrt(HEAD_DIM)
    p = jax.nn.softmax(scores, axis=-1)
    o = jnp.einsum('bhqk,bhkd->bhqd', p, v).transpose(0, 2, 1, 3).reshape(B, S, N_HEADS * HEAD_DIM)
    out = jnp.einsum('bso,do->bsd', o, wo)
    return out, ck, cv


if __name__ == "__main__":
    key = jax.random.PRNGKey(0)
    k1, k2, k3, k4, k5, k6, k7, _ = jax.random.split(key, 8)

    x = jax.random.normal(k1, (BATCH, SEQ_LEN, DIM), jnp.float32)
    wq = jax.random.normal(k2, (N_HEADS * HEAD_DIM, DIM), jnp.float32) * 0.05
    wk = jax.random.normal(k3, (N_KV_HEADS * HEAD_DIM, DIM), jnp.float32) * 0.05
    wv = jax.random.normal(k4, (N_KV_HEADS * HEAD_DIM, DIM), jnp.float32) * 0.05
    wo = jax.random.normal(k5, (DIM, N_HEADS * HEAD_DIM), jnp.float32) * 0.05
    # cache contents for already-decoded positions (positions > START_POS are masked)
    cache_k = jax.random.normal(k6, (BATCH, MAX_SEQ_LEN, N_KV_HEADS, HEAD_DIM), jnp.float32) * 0.1
    cache_v = jax.random.normal(k7, (BATCH, MAX_SEQ_LEN, N_KV_HEADS, HEAD_DIM), jnp.float32) * 0.1

    # rotary frequencies for position START_POS (what `freq_complex` encodes)
    inv_freq = 1.0 / (10000.0 ** (jnp.arange(0, HEAD_DIM, 2, dtype=jnp.float32) / HEAD_DIM))
    angles = (START_POS * inv_freq).reshape(SEQ_LEN, HEAD_DIM // 2)
    cos = jnp.cos(angles)
    sin = jnp.sin(angles)

    fwd = jax.jit(self_attention_forward, static_argnums=(1,))
    out, kc_new, vc_new = fwd(x, START_POS, cos, sin, wq, wk, wv, wo, cache_k, cache_v)
    out, kc_new, vc_new = jax.block_until_ready((out, kc_new, vc_new))

    ref_out, ref_ck, ref_cv = reference_forward(
        x, START_POS, cos, sin, wq, wk, wv, wo, cache_k, cache_v)

    assert jnp.allclose(out, ref_out, rtol=2e-2, atol=2e-2), "attention output mismatch"
    assert jnp.allclose(kc_new, ref_ck, rtol=2e-2, atol=2e-2), "k cache mismatch"
    assert jnp.allclose(vc_new, ref_cv, rtol=2e-2, atol=2e-2), "v cache mismatch"

    print("KERNEL_OK")
</pallas_src>

<mosaic_0001>
module attributes {stable_mosaic.version = 11 : i64} {
  func.func @self_attention_kernel(%arg0: i32, %arg1: memref<1x1x32xf32, #tpu.memory_space<vmem>>, %arg2: memref<32x64xf32, #tpu.memory_space<vmem>>, %arg3: memref<32x32xf32, #tpu.memory_space<vmem>>, %arg4: memref<1x48xf32, #tpu.memory_space<vmem>>, %arg5: memref<1x48xf32, #tpu.memory_space<vmem>>, %arg6: memref<48x48xf32, #tpu.memory_space<vmem>>, %arg7: memref<2x16x16xf32, #tpu.memory_space<any>>, %arg8: memref<2x16x16xf32, #tpu.memory_space<any>>, %arg9: memref<1x1x32xf32, #tpu.memory_space<vmem>>, %arg10: memref<2x16x16xf32, #tpu.memory_space<any>>, %arg11: memref<2x16x16xf32, #tpu.memory_space<any>>, %arg12: memref<8x16xf32, #tpu.memory_space<vmem>>, %arg13: memref<8x16xf32, #tpu.memory_space<vmem>>, %arg14: memref<4x!tpu.dma_semaphore, #tpu.memory_space<semaphore_mem>>) attributes {dimension_semantics = [#tpu.dimension_semantics<parallel>], iteration_bounds = array<i64: 2>, scalar_prefetch = 0 : i64, scratch_operands = 3 : i64, tpu.core_type = #tpu.core_type<tc>, window_params = [{transform_indices = @transform_0, window_bounds = array<i64: 1, 1, 32>}, {pipeline_mode = #tpu.pipeline_mode<synchronous>, transform_indices = @transform_1, window_bounds = array<i64: 32, 64>}, {pipeline_mode = #tpu.pipeline_mode<synchronous>, transform_indices = @transform_2, window_bounds = array<i64: 32, 32>}, {pipeline_mode = #tpu.pipeline_mode<synchronous>, transform_indices = @transform_3, window_bounds = array<i64: 1, 48>}, {pipeline_mode = #tpu.pipeline_mode<synchronous>, transform_indices = @transform_4, window_bounds = array<i64: 1, 48>}, {pipeline_mode = #tpu.pipeline_mode<synchronous>, transform_indices = @transform_5, window_bounds = array<i64: 48, 48>}, {}, {}, {transform_indices = @transform_8, window_bounds = array<i64: 1, 1, 32>}, {}, {}]} {
    %c0_i32 = arith.constant 0 : i32
    %c0_i32_0 = arith.constant 0 : i32
    %c0_i32_1 = arith.constant 0 : i32
    %0 = tpu.memref_slice %arg7[%arg0, %c0_i32_0, %c0_i32_1] : memref<2x16x16xf32, #tpu.memory_space<any>> -> memref<1x8x16xf32, #tpu.memory_space<any>>
    %1 = tpu.memref_squeeze %0 : memref<1x8x16xf32, #tpu.memory_space<any>> -> memref<8x16xf32, #tpu.memory_space<any>>
    %2 = tpu.memref_slice %arg14[%c0_i32] : memref<4x!tpu.dma_semaphore, #tpu.memory_space<semaphore_mem>> -> memref<1x!tpu.dma_semaphore, #tpu.memory_space<semaphore_mem>>
    %3 = tpu.memref_squeeze %2 : memref<1x!tpu.dma_semaphore, #tpu.memory_space<semaphore_mem>> -> memref<!tpu.dma_semaphore, #tpu.memory_space<semaphore_mem>>
    tpu.enqueue_dma source(%1 : memref<8x16xf32, #tpu.memory_space<any>>) target(%arg12 : memref<8x16xf32, #tpu.memory_space<vmem>>) target_semaphore(%3 : memref<!tpu.dma_semaphore, #tpu.memory_space<semaphore_mem>>)
    %c1_i32 = arith.constant 1 : i32
    %c0_i32_2 = arith.constant 0 : i32
    %c0_i32_3 = arith.constant 0 : i32
    %4 = tpu.memref_slice %arg8[%arg0, %c0_i32_2, %c0_i32_3] : memref<2x16x16xf32, #tpu.memory_space<any>> -> memref<1x8x16xf32, #tpu.memory_space<any>>
    %5 = tpu.memref_squeeze %4 : memref<1x8x16xf32, #tpu.memory_space<any>> -> memref<8x16xf32, #tpu.memory_space<any>>
    %6 = tpu.memref_slice %arg14[%c1_i32] : memref<4x!tpu.dma_semaphore, #tpu.memory_space<semaphore_mem>> -> memref<1x!tpu.dma_semaphore, #tpu.memory_space<semaphore_mem>>
    %7 = tpu.memref_squeeze %6 : memref<1x!tpu.dma_semaphore, #tpu.memory_space<semaphore_mem>> -> memref<!tpu.dma_semaphore, #tpu.memory_space<semaphore_mem>>
    tpu.enqueue_dma source(%5 : memref<8x16xf32, #tpu.memory_space<any>>) target(%arg13 : memref<8x16xf32, #tpu.memory_space<vmem>>) target_semaphore(%7 : memref<!tpu.dma_semaphore, #tpu.memory_space<semaphore_mem>>)
    %c0 = arith.constant 0 : index
    %c0_4 = arith.constant 0 : index
    %c0_5 = arith.constant 0 : index
    %8 = vector.load %arg1[%c0, %c0_4, %c0_5] : memref<1x1x32xf32, #tpu.memory_space<vmem>>, vector<1x1x32xf32>
    %9 = vector.shape_cast %8 : vector<1x1x32xf32> to vector<1x32xf32>
    %c0_6 = arith.constant 0 : index
    %c0_7 = arith.constant 0 : index
    %10 = vector.load %arg2[%c0_6, %c0_7] : memref<32x64xf32, #tpu.memory_space<vmem>>, vector<32x64xf32>
    %cst = arith.constant dense<0.000000e+00> : vector<1x64xf32>
    %11 = tpu.matmul %9, %10, %cst {dimension_numbers = #tpu.dot_dimension_numbers<[1], [0], [0], [1], [0, 0, 1, 1], [], []>} : vector<1x32xf32>, vector<32x64xf32>, vector<1x64xf32> -> vector<1x64xf32>
    %12 = vector.extract_strided_slice %11 {offsets = [0, 0], sizes = [1, 48], strides = [1, 1]} : vector<1x64xf32> to vector<1x48xf32>
    %c0_8 = arith.constant 0 : index
    %c0_9 = arith.constant 0 : index
    %13 = vector.load %arg6[%c0_8, %c0_9] : memref<48x48xf32, #tpu.memory_space<vmem>>, vector<48x48xf32>
    %cst_10 = arith.constant dense<0.000000e+00> : vector<1x48xf32>
    %14 = tpu.matmul %12, %13, %cst_10 {dimension_numbers = #tpu.dot_dimension_numbers<[1], [0], [0], [1], [0, 0, 1, 1], [], []>} : vector<1x48xf32>, vector<48x48xf32>, vector<1x48xf32> -> vector<1x48xf32>
    %c0_11 = arith.constant 0 : index
    %c0_12 = arith.constant 0 : index
    %15 = vector.load %arg4[%c0_11, %c0_12] : memref<1x48xf32, #tpu.memory_space<vmem>>, vector<1x48xf32>
    %16 = arith.mulf %12, %15 : vector<1x48xf32>
    %c0_13 = arith.constant 0 : index
    %c0_14 = arith.constant 0 : index
    %17 = vector.load %arg5[%c0_13, %c0_14] : memref<1x48xf32, #tpu.memory_space<vmem>>, vector<1x48xf32>
    %18 = arith.mulf %14, %17 : vector<1x48xf32>
    %19 = arith.addf %16, %18 : vector<1x48xf32>
    %20 = vector.extract_strided_slice %19 {offsets = [0, 0], sizes = [1, 32], strides = [1, 1]} : vector<1x48xf32> to vector<1x32xf32>
    %cst_15 = arith.constant 0.353553385 : f32
    %21 = vector.broadcast %cst_15 : f32 to vector<1x32xf32>
    %22 = arith.mulf %20, %21 : vector<1x32xf32>
    %23 = vector.extract_strided_slice %19 {offsets = [0, 32], sizes = [1, 16], strides = [1, 1]} : vector<1x48xf32> to vector<1x16xf32>
    %24 = vector.extract_strided_slice %11 {offsets = [0, 48], sizes = [1, 16], strides = [1, 1]} : vector<1x64xf32> to vector<1x16xf32>
    %c0_i32_16 = arith.constant 0 : i32
    %c0_i32_17 = arith.constant 0 : i32
    %c0_i32_18 = arith.constant 0 : i32
    %25 = tpu.memref_slice %arg7[%arg0, %c0_i32_17, %c0_i32_18] : memref<2x16x16xf32, #tpu.memory_space<any>> -> memref<1x8x16xf32, #tpu.memory_space<any>>
    %26 = tpu.memref_squeeze %25 : memref<1x8x16xf32, #tpu.memory_space<any>> -> memref<8x16xf32, #tpu.memory_space<any>>
    %27 = tpu.memref_slice %arg14[%c0_i32_16] : memref<4x!tpu.dma_semaphore, #tpu.memory_space<semaphore_mem>> -> memref<1x!tpu.dma_semaphore, #tpu.memory_space<semaphore_mem>>
    %28 = tpu.memref_squeeze %27 : memref<1x!tpu.dma_semaphore, #tpu.memory_space<semaphore_mem>> -> memref<!tpu.dma_semaphore, #tpu.memory_space<semaphore_mem>>
    tpu.wait_dma2 semaphore(%28 : memref<!tpu.dma_semaphore, #tpu.memory_space<semaphore_mem>>) src(%26 : memref<8x16xf32, #tpu.memory_space<any>>) dst(%arg12 : memref<8x16xf32, #tpu.memory_space<vmem>>)
    %c1_i32_19 = arith.constant 1 : i32
    %c0_i32_20 = arith.constant 0 : i32
    %c0_i32_21 = arith.constant 0 : i32
    %29 = tpu.memref_slice %arg8[%arg0, %c0_i32_20, %c0_i32_21] : memref<2x16x16xf32, #tpu.memory_space<any>> -> memref<1x8x16xf32, #tpu.memory_space<any>>
    %30 = tpu.memref_squeeze %29 : memref<1x8x16xf32, #tpu.memory_space<any>> -> memref<8x16xf32, #tpu.memory_space<any>>
    %31 = tpu.memref_slice %arg14[%c1_i32_19] : memref<4x!tpu.dma_semaphore, #tpu.memory_space<semaphore_mem>> -> memref<1x!tpu.dma_semaphore, #tpu.memory_space<semaphore_mem>>
    %32 = tpu.memref_squeeze %31 : memref<1x!tpu.dma_semaphore, #tpu.memory_space<semaphore_mem>> -> memref<!tpu.dma_semaphore, #tpu.memory_space<semaphore_mem>>
    tpu.wait_dma2 semaphore(%32 : memref<!tpu.dma_semaphore, #tpu.memory_space<semaphore_mem>>) src(%30 : memref<8x16xf32, #tpu.memory_space<any>>) dst(%arg13 : memref<8x16xf32, #tpu.memory_space<vmem>>)
    %c5 = arith.constant 5 : index
    %c0_22 = arith.constant 0 : index
    %33 = vector.load %arg12[%c5, %c0_22] : memref<8x16xf32, #tpu.memory_space<vmem>>, vector<1x16xf32>
    tpu.vector_store %arg12[%c5, %c0_22], %23 {strides = array<i32>} : memref<8x16xf32, #tpu.memory_space<vmem>>, vector<1x16xf32>,
    %c5_23 = arith.constant 5 : index
    %c0_24 = arith.constant 0 : index
    %34 = vector.load %arg13[%c5_23, %c0_24] : memref<8x16xf32, #tpu.memory_space<vmem>>, vector<1x16xf32>
    tpu.vector_store %arg13[%c5_23, %c0_24], %24 {strides = array<i32>} : memref<8x16xf32, #tpu.memory_space<vmem>>, vector<1x16xf32>,
    %c2_i32 = arith.constant 2 : i32
    %c5_i32 = arith.constant 5 : i32
    %c0_i32_25 = arith.constant 0 : i32
    %35 = tpu.memref_slice %arg12[%c5_i32, %c0_i32_25] : memref<8x16xf32, #tpu.memory_space<vmem>> -> memref<1x16xf32, #tpu.memory_space<vmem>>
    %c5_i32_26 = arith.constant 5 : i32
    %c0_i32_27 = arith.constant 0 : i32
    %36 = tpu.memref_slice %arg10[%arg0, %c5_i32_26, %c0_i32_27] : memref<2x16x16xf32, #tpu.memory_space<any>> -> memref<1x1x16xf32, #tpu.memory_space<any>>
    %37 = tpu.memref_squeeze %36 : memref<1x1x16xf32, #tpu.memory_space<any>> -> memref<1x16xf32, #tpu.memory_space<any>>
    %38 = tpu.memref_slice %arg14[%c2_i32] : memref<4x!tpu.dma_semaphore, #tpu.memory_space<semaphore_mem>> -> memref<1x!tpu.dma_semaphore, #tpu.memory_space<semaphore_mem>>
    %39 = tpu.memref_squeeze %38 : memref<1x!tpu.dma_semaphore, #tpu.memory_space<semaphore_mem>> -> memref<!tpu.dma_semaphore, #tpu.memory_space<semaphore_mem>>
    tpu.enqueue_dma source(%35 : memref<1x16xf32, #tpu.memory_space<vmem>>) target(%37 : memref<1x16xf32, #tpu.memory_space<any>>) target_semaphore(%39 : memref<!tpu.dma_semaphore, #tpu.memory_space<semaphore_mem>>)
    %c3_i32 = arith.constant 3 : i32
    %c5_i32_28 = arith.constant 5 : i32
    %c0_i32_29 = arith.constant 0 : i32
    %40 = tpu.memref_slice %arg13[%c5_i32_28, %c0_i32_29] : memref<8x16xf32, #tpu.memory_space<vmem>> -> memref<1x16xf32, #tpu.memory_space<vmem>>
    %c5_i32_30 = arith.constant 5 : i32
    %c0_i32_31 = arith.constant 0 : i32
    %41 = tpu.memref_slice %arg11[%arg0, %c5_i32_30, %c0_i32_31] : memref<2x16x16xf32, #tpu.memory_space<any>> -> memref<1x1x16xf32, #tpu.memory_space<any>>
    %42 = tpu.memref_squeeze %41 : memref<1x1x16xf32, #tpu.memory_space<any>> -> memref<1x16xf32, #tpu.memory_space<any>>
    %43 = tpu.memref_slice %arg14[%c3_i32] : memref<4x!tpu.dma_semaphore, #tpu.memory_space<semaphore_mem>> -> memref<1x!tpu.dma_semaphore, #tpu.memory_space<semaphore_mem>>
    %44 = tpu.memref_squeeze %43 : memref<1x!tpu.dma_semaphore, #tpu.memory_space<semaphore_mem>> -> memref<!tpu.dma_semaphore, #tpu.memory_space<semaphore_mem>>
    tpu.enqueue_dma source(%40 : memref<1x16xf32, #tpu.memory_space<vmem>>) target(%42 : memref<1x16xf32, #tpu.memory_space<any>>) target_semaphore(%44 : memref<!tpu.dma_semaphore, #tpu.memory_space<semaphore_mem>>)
    %45 = tpu.iota {dimensions = array<i32: 1>} : vector<1x8xi32>
    %c5_i32_32 = arith.constant 5 : i32
    %46 = vector.broadcast %c5_i32_32 : i32 to vector<1x8xi32>
    %47 = arith.cmpi sle, %45, %46 : vector<1x8xi32>
    %cst_33 = arith.constant 0.000000e+00 : f32
    %cst_34 = arith.constant -1.000000e+30 : f32
    %48 = vector.broadcast %cst_33 : f32 to vector<1x8xf32>
    %49 = vector.broadcast %cst_34 : f32 to vector<1x8xf32>
    %50 = arith.select %47, %48, %49 : vector<1x8xi1>, vector<1x8xf32>
    %c0_35 = arith.constant 0 : index
    %c0_36 = arith.constant 0 : index
    %51 = vector.load %arg12[%c0_35, %c0_36] : memref<8x16xf32, #tpu.memory_space<vmem>>, vector<8x8xf32>
    %52 = vector.extract_strided_slice %22 {offsets = [0, 0], sizes = [1, 8], strides = [1, 1]} : vector<1x32xf32> to vector<1x8xf32>
    %53 = vector.extract_strided_slice %22 {offsets = [0, 8], sizes = [1, 8], strides = [1, 1]} : vector<1x32xf32> to vector<1x8xf32>
    %54 = tpu.concatenate %52, %53 in 0 : vector<1x8xf32>, vector<1x8xf32> -> vector<2x8xf32>
    %cst_37 = arith.constant dense<0.000000e+00> : vector<2x8xf32>
    %55 = tpu.matmul %54, %51, %cst_37 {dimension_numbers = #tpu.dot_dimension_numbers<[1], [1], [0], [0], [0, 0, 1, 0], [], []>} : vector<2x8xf32>, vector<8x8xf32>, vector<2x8xf32> -> vector<2x8xf32>
    %c0_38 = arith.constant 0 : index
    %c8 = arith.constant 8 : index
    %56 = vector.load %arg12[%c0_38, %c8] : memref<8x16xf32, #tpu.memory_space<vmem>>, vector<8x8xf32>
    %57 = vector.extract_strided_slice %22 {offsets = [0, 16], sizes = [1, 8], strides = [1, 1]} : vector<1x32xf32> to vector<1x8xf32>
    %58 = vector.extract_strided_slice %22 {offsets = [0, 24], sizes = [1, 8], strides = [1, 1]} : vector<1x32xf32> to vector<1x8xf32>
    %59 = tpu.concatenate %57, %58 in 0 : vector<1x8xf32>, vector<1x8xf32> -> vector<2x8xf32>
    %cst_39 = arith.constant dense<0.000000e+00> : vector<2x8xf32>
    %60 = tpu.matmul %59, %56, %cst_39 {dimension_numbers = #tpu.dot_dimension_numbers<[1], [1], [0], [0], [0, 0, 1, 0], [], []>} : vector<2x8xf32>, vector<8x8xf32>, vector<2x8xf32> -> vector<2x8xf32>
    %61 = tpu.concatenate %55, %60 in 0 : vector<2x8xf32>, vector<2x8xf32> -> vector<4x8xf32>
    %62 = vector.broadcast %50 : vector<1x8xf32> to vector<4x8xf32>
    %63 = arith.addf %61, %62 : vector<4x8xf32>
    %cst_40 = arith.constant dense<0xFF800000> : vector<4xf32>
    %64 = vector.multi_reduction <maximumf>, %63, %cst_40 [1] : vector<4x8xf32> to vector<4xf32>
    %65 = vector.shape_cast %64 : vector<4xf32> to vector<4x1xf32>
    %66 = vector.broadcast %65 : vector<4x1xf32> to vector<4x8xf32>
    %67 = arith.subf %63, %66 : vector<4x8xf32>
    %68 = math.exp %67 : vector<4x8xf32>
    %cst_41 = arith.constant dense<0.000000e+00> : vector<4xf32>
    %69 = vector.multi_reduction <add>, %68, %cst_41 [1] : vector<4x8xf32> to vector<4xf32>
    %70 = vector.shape_cast %69 : vector<4xf32> to vector<4x1xf32>
    %71 = tpu.reciprocal %70 {approx = true} : vector<4x1xf32> -> vector<4x1xf32>
    %72 = vector.broadcast %71 : vector<4x1xf32> to vector<4x8xf32>
    %73 = arith.mulf %68, %72 : vector<4x8xf32>
    %c0_42 = arith.constant 0 : index
    %c0_43 = arith.constant 0 : index
    %74 = vector.load %arg13[%c0_42, %c0_43] : memref<8x16xf32, #tpu.memory_space<vmem>>, vector<8x8xf32>
    %75 = vector.extract_strided_slice %73 {offsets = [0, 0], sizes = [2, 8], strides = [1, 1]} : vector<4x8xf32> to vector<2x8xf32>
    %cst_44 = arith.constant dense<0.000000e+00> : vector<2x8xf32>
    %76 = tpu.matmul %75, %74, %cst_44 {dimension_numbers = #tpu.dot_dimension_numbers<[1], [0], [0], [1], [0, 0, 1, 1], [], []>} : vector<2x8xf32>, vector<8x8xf32>, vector<2x8xf32> -> vector<2x8xf32>
    %77 = vector.extract_strided_slice %76 {offsets = [0, 0], sizes = [1, 8], strides = [1, 1]} : vector<2x8xf32> to vector<1x8xf32>
    %78 = vector.extract_strided_slice %76 {offsets = [1, 0], sizes = [1, 8], strides = [1, 1]} : vector<2x8xf32> to vector<1x8xf32>
    %c0_45 = arith.constant 0 : index
    %c8_46 = arith.constant 8 : index
    %79 = vector.load %arg13[%c0_45, %c8_46] : memref<8x16xf32, #tpu.memory_space<vmem>>, vector<8x8xf32>
    %80 = vector.extract_strided_slice %73 {offsets = [2, 0], sizes = [2, 8], strides = [1, 1]} : vector<4x8xf32> to vector<2x8xf32>
    %cst_47 = arith.constant dense<0.000000e+00> : vector<2x8xf32>
    %81 = tpu.matmul %80, %79, %cst_47 {dimension_numbers = #tpu.dot_dimension_numbers<[1], [0], [0], [1], [0, 0, 1, 1], [], []>} : vector<2x8xf32>, vector<8x8xf32>, vector<2x8xf32> -> vector<2x8xf32>
    %82 = vector.extract_strided_slice %81 {offsets = [0, 0], sizes = [1, 8], strides = [1, 1]} : vector<2x8xf32> to vector<1x8xf32>
    %83 = vector.extract_strided_slice %81 {offsets = [1, 0], sizes = [1, 8], strides = [1, 1]} : vector<2x8xf32> to vector<1x8xf32>
    %84 = tpu.concatenate %77, %78, %82, %83 in 1 : vector<1x8xf32>, vector<1x8xf32>, vector<1x8xf32>, vector<1x8xf32> -> vector<1x32xf32>
    %c0_48 = arith.constant 0 : index
    %c0_49 = arith.constant 0 : index
    %85 = vector.load %arg3[%c0_48, %c0_49] : memref<32x32xf32, #tpu.memory_space<vmem>>, vector<32x32xf32>
    %cst_50 = arith.constant dense<0.000000e+00> : vector<1x32xf32>
    %86 = tpu.matmul %84, %85, %cst_50 {dimension_numbers = #tpu.dot_dimension_numbers<[1], [0], [0], [1], [0, 0, 1, 1], [], []>} : vector<1x32xf32>, vector<32x32xf32>, vector<1x32xf32> -> vector<1x32xf32>
    %87 = vector.shape_cast %86 : vector<1x32xf32> to vector<1x1x32xf32>
    %c0_51 = arith.constant 0 : index
    %c0_52 = arith.constant 0 : index
    %c0_53 = arith.constant 0 : index
    %88 = vector.load %arg9[%c0_51, %c0_52, %c0_53] : memref<1x1x32xf32, #tpu.memory_space<vmem>>, vector<1x1x32xf32>
    tpu.vector_store %arg9[%c0_51, %c0_52, %c0_53], %87 {strides = array<i32>} : memref<1x1x32xf32, #tpu.memory_space<vmem>>, vector<1x1x32xf32>,
    %c2_i32_54 = arith.constant 2 : i32
    %c5_i32_55 = arith.constant 5 : i32
    %c0_i32_56 = arith.constant 0 : i32
    %89 = tpu.memref_slice %arg12[%c5_i32_55, %c0_i32_56] : memref<8x16xf32, #tpu.memory_space<vmem>> -> memref<1x16xf32, #tpu.memory_space<vmem>>
    %c5_i32_57 = arith.constant 5 : i32
    %c0_i32_58 = arith.constant 0 : i32
    %90 = tpu.memref_slice %arg10[%arg0, %c5_i32_57, %c0_i32_58] : memref<2x16x16xf32, #tpu.memory_space<any>> -> memref<1x1x16xf32, #tpu.memory_space<any>>
    %91 = tpu.memref_squeeze %90 : memref<1x1x16xf32, #tpu.memory_space<any>> -> memref<1x16xf32, #tpu.memory_space<any>>
    %92 = tpu.memref_slice %arg14[%c2_i32_54] : memref<4x!tpu.dma_semaphore, #tpu.memory_space<semaphore_mem>> -> memref<1x!tpu.dma_semaphore, #tpu.memory_space<semaphore_mem>>
    %93 = tpu.memref_squeeze %92 : memref<1x!tpu.dma_semaphore, #tpu.memory_space<semaphore_mem>> -> memref<!tpu.dma_semaphore, #tpu.memory_space<semaphore_mem>>
    tpu.wait_dma2 semaphore(%93 : memref<!tpu.dma_semaphore, #tpu.memory_space<semaphore_mem>>) src(%89 : memref<1x16xf32, #tpu.memory_space<vmem>>) dst(%91 : memref<1x16xf32, #tpu.memory_space<any>>)
    %c3_i32_59 = arith.constant 3 : i32
    %c5_i32_60 = arith.constant 5 : i32
    %c0_i32_61 = arith.constant 0 : i32
    %94 = tpu.memref_slice %arg13[%c5_i32_60, %c0_i32_61] : memref<8x16xf32, #tpu.memory_space<vmem>> -> memref<1x16xf32, #tpu.memory_space<vmem>>
    %c5_i32_62 = arith.constant 5 : i32
    %c0_i32_63 = arith.constant 0 : i32
    %95 = tpu.memref_slice %arg11[%arg0, %c5_i32_62, %c0_i32_63] : memref<2x16x16xf32, #tpu.memory_space<any>> -> memref<1x1x16xf32, #tpu.memory_space<any>>
    %96 = tpu.memref_squeeze %95 : memref<1x1x16xf32, #tpu.memory_space<any>> -> memref<1x16xf32, #tpu.memory_space<any>>
    %97 = tpu.memref_slice %arg14[%c3_i32_59] : memref<4x!tpu.dma_semaphore, #tpu.memory_space<semaphore_mem>> -> memref<1x!tpu.dma_semaphore, #tpu.memory_space<semaphore_mem>>
    %98 = tpu.memref_squeeze %97 : memref<1x!tpu.dma_semaphore, #tpu.memory_space<semaphore_mem>> -> memref<!tpu.dma_semaphore, #tpu.memory_space<semaphore_mem>>
    tpu.wait_dma2 semaphore(%98 : memref<!tpu.dma_semaphore, #tpu.memory_space<semaphore_mem>>) src(%94 : memref<1x16xf32, #tpu.memory_space<vmem>>) dst(%96 : memref<1x16xf32, #tpu.memory_space<any>>)
    return
  }
  func.func @transform_0(%arg0: i32) -> (i32, i32, i32) {
    %c0_i32 = arith.constant 0 : i32
    %c0_i32_0 = arith.constant 0 : i32
    %c0_i32_1 = arith.constant 0 : i32
    return %arg0, %c0_i32, %c0_i32_0 : i32, i32, i32
  }
  func.func @transform_1(%arg0: i32) -> (i32, i32) {
    %c0_i32 = arith.constant 0 : i32
    %c0_i32_0 = arith.constant 0 : i32
    %c0_i32_1 = arith.constant 0 : i32
    return %c0_i32, %c0_i32_0 : i32, i32
  }
  func.func @transform_2(%arg0: i32) -> (i32, i32) {
    %c0_i32 = arith.constant 0 : i32
    %c0_i32_0 = arith.constant 0 : i32
    %c0_i32_1 = arith.constant 0 : i32
    return %c0_i32, %c0_i32_0 : i32, i32
  }
  func.func @transform_3(%arg0: i32) -> (i32, i32) {
    %c0_i32 = arith.constant 0 : i32
    %c0_i32_0 = arith.constant 0 : i32
    %c0_i32_1 = arith.constant 0 : i32
    return %c0_i32, %c0_i32_0 : i32, i32
  }
  func.func @transform_4(%arg0: i32) -> (i32, i32) {
    %c0_i32 = arith.constant 0 : i32
    %c0_i32_0 = arith.constant 0 : i32
    %c0_i32_1 = arith.constant 0 : i32
    return %c0_i32, %c0_i32_0 : i32, i32
  }
  func.func @transform_5(%arg0: i32) -> (i32, i32) {
    %c0_i32 = arith.constant 0 : i32
    %c0_i32_0 = arith.constant 0 : i32
    %c0_i32_1 = arith.constant 0 : i32
    return %c0_i32, %c0_i32_0 : i32, i32
  }
  func.func @transform_8(%arg0: i32) -> (i32, i32, i32) {
    %c0_i32 = arith.constant 0 : i32
    %c0_i32_0 = arith.constant 0 : i32
    %c0_i32_1 = arith.constant 0 : i32
    return %arg0, %c0_i32, %c0_i32_0 : i32, i32, i32
  }
}

</mosaic_0001>

<bundles_post_ra>
// kernel: self_attention_forward.1
= control target key start
LH: loop header
LB: loop body
LE: loop exit
PB: predicated region body
PF: predicated region fallthrough
CT: control target
= control target key end

     0   :  { %s1163_s0 = inlined_call_operand.vmem [shape: f32[2,1,32], index: 0, kind: input, shape index: {}]   ;;  %s1164_s1 = inlined_call_operand.vmem [shape: f32[32,64], index: 1, kind: input, shape index: {}]   ;;  %s1165_s2 = inlined_call_operand.vmem [shape: f32[32,32], index: 2, kind: input, shape index: {}]   ;;  %s1166_s3 = inlined_call_operand.vmem [shape: f32[1,48], index: 3, kind: input, shape index: {}]   ;;  %s1167_s4 = inlined_call_operand.vmem [shape: f32[1,48], index: 4, kind: input, shape index: {}]   ;;  %s1168_s5 = inlined_call_operand.vmem [shape: f32[48,48], index: 5, kind: input, shape index: {}]   ;;  %s1169_s6 = inlined_call_operand.vmem [shape: f32[2,16,16], index: 6, kind: input, shape index: {}, may-alias: {6,9}]   ;;  %s1170_s7 = inlined_call_operand.vmem [shape: f32[2,16,16], index: 7, kind: input, shape index: {}, may-alias: {7,10}]   ;;  %s1171_s8 = inlined_call_operand.hbm [shape: f32[2,1,32], index: 8, kind: output, shape index: {0}]   ;;  %s1172_s9 = inlined_call_operand.vmem [shape: f32[2,16,16], index: 9, kind: output, shape index: {1}, may-alias: {6,9}]   ;;  %s1173_s10 = inlined_call_operand.vmem [shape: f32[2,16,16], index: 10, kind: output, shape index: {2}, may-alias: {7,10}]  }
   0x1   :  { %1176 = sst [smem:[#allocation18_spill]] %s1163_s0 }
   0x2   :  { %16 = vsyncpa [#allocation6], 0 }
   0x3   :  { %18 = vsyncpa [#allocation6 + $0x1], 0  ;;  %s991_s13 = smov 0   ;;  %s993_s14 = smov 0  }
   0x4   :  { %s995_s15 = smov 0   ;;  %s997_s16 = smov 0  }
   0x5 LB: > { %1177 = sst [smem:[#allocation16_spill]] %s922_s15  ;;  %s1012_s17 = sadd.s32 4294967295, %s926_s16   ;;  %s926_s16 = sphi %s997_s16, %s1187_s16   ;;  %s922_s15 = sphi %s995_s15, %s1184_s15   ;;  %s918_s14 = sphi %s993_s14, %s1186_s14   ;;  %s914_s13 = sphi %s991_s13, %s1185_s13  }
   0x6   : > { %s781_s18 = sadd.s32 4294967294, %s926_s16   ;;  %s1016_s19 = sadd.s32 1, %s926_s16  }
   0x7   : > { %s162_s20 = sadd.s32 1, %s922_s15  ;;  %s159_s21 = ssub.s32 %s926_s16, %s1016_s19 }
   0x8   : > { %p172_p0 = scmp.ne.s32.totalorder %s922_s15, %s918_s14  ;;  %p160_p1 = scmp.eq.s32.totalorder %s159_s21, 0 }
   0x9   : > { %p173_p2 = scmp.eq.s32.totalorder %s1012_s17, 1  ;;  %p178_p3 = scmp.ne.s32.totalorder %s918_s14, %s914_s13 }
   0xa   : > { %p179_p4 = scmp.eq.s32.totalorder %s781_s18, 1  ;;  %p784_p7 = scmp.ge.s32.totalorder %s926_s16, 1 }
   0xb   : > { %s1027_s22 = scalar_select %p160_p1, %s922_s15, %s162_s20  }
   0xc   : > { %p1029_p5 = por %p173_p2, %p172_p0  ;;  %p1033_p6 = por %p179_p4, %p178_p3 }
   0xd   : > { %1178 = sst [smem:[#allocation17_spill]] %s1027_s22  ;;  %p218_p8 = scmp.lt.s32.totalorder %s926_s16, 3 }
   0xf   : > { %p219_p9 = pnand %p784_p7, %p218_p8 }
  0x10   : > { %s1175_s25 = sand.u32 (!%p219_p9), 1, %s918_s14   ;;  %p245_p10 = scmp.lt.s32.totalorder (!%p219_p9), %s1012_s17, 1 }
  0x11   : > { %222 = sbr.rel (%p219_p9) target bundleno = 1463 (0x5b7), region = 44  ;;  %s1042_s26 = sshll.u32 (!%p219_p9), %s1012_s17, 4 }
  0x12   : > { %s249_s30 = scalar_lea.vmem (!%p219_p9), %s1169_s6, %s1042_s26  ;;  %s1181_s0 = sld [smem:[#allocation18_spill]] (!%p219_p9) }
  0x13   : > { %s1054_s20 = scalar_lea.vmem (!%p219_p9), [#allocation5], %s1175_s25 }
  0x16   : > { %s246_s27 = scalar_select %p245_p10, %s1012_s17, 1  ;;  %v276_v0 = vld [vmem:[%s249_s30] sm:$0xff] }
  0x17   : > { %277 = vst [vmem:[#allocation2] sm:$0xff] %v276_v0 }
  0x18   : > { %s247_s18 = scalar_lea.vmem %s1181_s0, %s246_s27 }
  0x19   : > { %283 = vsyncadd [#allocation4], 128  ;;  %s284_s15 = scalar_lea.vmem %s1170_s7, %s1042_s26 }
  0x1a   : > { %v312_v1 = vld [vmem:[%s284_s15] sm:$0xff] }
  0x1b   : > { %313 = vst [vmem:[#allocation3] sm:$0xff] %v312_v1 }
  0x1c   : > { %319 = vsyncadd [#allocation4 + $0x1], 128  ;;  %v324_v2 = vld [vmem:[%s1164_s1 + $0x18] sm:$0xff]  ;;  %v323_v3 = vld [vmem:[%s1164_s1 + $0x10] sm:$0xff]  ;;  %vm325_vm0 = vcmask 261120   ;;  %vm355_vm1 = vcmask 392192  }
  0x1d   : > { %341 = vmatpush.msra.mxu0 %v324_v2  ;;  %v322_v4 = vld [vmem:[%s1164_s1 + $0x8] sm:$0xff]  ;;  %v353_v6 = vld [vmem:[%s1168_s5 + $0x20] sm:$0xff]  ;;  %v352_v8 = vld [vmem:[%s1168_s5 + $0x18] sm:$0xff] }
  0x1e   : > { %v354_v5 = vld [vmem:[%s1168_s5 + $0x28] sm:$0xff]  ;;  %v321_v7 = vld [vmem:[%s1164_s1] sm:$0xff]  ;;  %v351_v10 = vld [vmem:[%s1168_s5 + $0x10] sm:$0xff] }
  0x1f   : > { %342 = vmatpush.msra.mxu0 %v323_v3  ;;  %369 = vmatpush.msra.mxu1 %v354_v5  ;;  %v320_v9 = vld [vmem:[%s247_s18] sm:$0x1]  ;;  %v350_v11 = vld [vmem:[%s1168_s5 + $0x8] sm:$0xff] }
  0x20   : > { %v349_v12 = vld [vmem:[%s1168_s5] sm:$0xff] }
  0x21   : > { %343 = vmatpush.msra.mxu0 %v322_v4  ;;  %370 = vmatpush.msra.mxu1 %v353_v6  ;;  %v379_v14 = vld [vmem:[%s1166_s3] sm:$0x1] }
  0x22   : > { %v381_v15 = vld [vmem:[%s1167_s4] sm:$0x1] }
  0x23   : > { %344 = vmatpush.msra.mxu0 %v321_v7  ;;  %371 = vmatpush.msra.mxu1 %v352_v8 }
  0x24   : > { %786 = vmatmul.msk.f32.vlgmr.msra.gmra.mxu0 %vm325_vm0, %v320_v9 }
  0x25   : > { %372 = vmatpush.msra.mxu1 %v351_v10 }
  0x27   : > { %373 = vmatpush.msra.mxu1 %v350_v11 }
  0x29   : > { %374 = vmatpush.msra.mxu1 %v349_v12 }
  0xa1   : > { %v346_v13 = vpop.f32.mrf.mxu0 }
  0xa2   : > { %787 = vmatmul.msk.f32.vlgmr.msra.gmra.mxu1 %vm355_vm1, %v346_v13  ;;  %v380_v17 = vmul.f32 %v379_v14, %v346_v13 }
 0x11f   : > { %v376_v16 = vpop.f32.mrf.mxu1 }
 0x120   : > { %v382_v18 = vmul.f32 %v381_v15, %v376_v16 }
 0x122   : > { %v383_v19 = vadd.f32 %v382_v18, %v380_v17 }
 0x124   : > { %v384_v20 = vmul.f32 0.35355338, %v383_v19 }
 0x125   : > { %900 = dma.done.wait [#allocation4], 128 }
 0x126   : > { %901 = vsyncadd [#allocation4], 4294967168 }
 0x127   : > { %902 = dma.done.wait [#allocation4 + $0x1], 128 }
 0x128   : > { %903 = vsyncadd [#allocation4 + $0x1], 4294967168  ;;  %s928_s29 = smov 96   ;;  %s929_s11 = smov 80   ;;  %vm394_vm2 = vcmask 122880  }
 0x129   : > { %391 = vrot.lane.b32.xlu0 %v383_v19, %s928_s29  ;;  %s734_s27 = scalar_lea.vmem %s1172_s9, %s1042_s26 }
 0x131   : > { %396 = vrot.lane.b32.xlu0 %v346_v13, %s929_s11 }
 0x19b   : > { %v392_v21 = vpop.permute.xlu0 %391 }
 0x19c   : > { %395 = vst.msk [vmem:[#allocation2 + $0x5] sm:$0x1] %vm394_vm2, %v392_v21 }
 0x1a3   : > { %v418_v22 = vld [vmem:[#allocation2 + $0x5] sm:$0x1]  ;;  %v397_v23 = vpop.permute.xlu0 %396 }
 0x1a4   : > { %789 = vst [vmem:[%s734_s27 + $0x5] sm:$0x1] %v418_v22 }
 0x1a5   : > { %399 = vst.msk [vmem:[#allocation3 + $0x5] sm:$0x1] %vm394_vm2, %v397_v23 }
 0x1a6   : > { %437 = vsyncadd [#allocation4 + $0x2], 16  ;;  %s737_s15 = scalar_lea.vmem %s1173_s10, %s1042_s26  ;;  %v481_v25 = vrot.slane %v384_v20, 7  ;;  %v479_v26 = vld [vmem:[#allocation2] sm:$0xff] }
 0x1ac   : > { %v455_v24 = vld [vmem:[#allocation3 + $0x5] sm:$0x1] }
 0x1ad   : > { %791 = vst [vmem:[%s737_s15 + $0x5] sm:$0x1] %v455_v24 }
 0x1ae   : > { %474 = vsyncadd [#allocation4 + $0x3], 16  ;;  %vm487_vm3 = vcmask 64512   ;;  %s930_s18 = smov 120   ;;  %vm485_vm4 = vcmask 1040384   ;;  %s931_s22 = smov 112   ;;  %v475_v31 = vlaneseq }
 0x1af   : > { %792 = vmatpush.xpose.msk.msra.mxu2 %vm487_vm3, %v479_v26  ;;  %482 = vrot.lane.b32.xlu0 %v481_v25, %s930_s18  ;;  %vm545_vm6 = vcmask 1041408   ;;  %v932_v35 = vmov -1e+30   ;;  %vm548_vm7 = vcmask 60416   ;;  %v560_v41 = vld [vmem:[#allocation3] sm:$0xff]  ;;  %s933_s26 = smov 8  }
 0x1b0   : > { %v476_v32 = vand.u32 127, %v475_v31  ;;  %s934_s21 = smov 16   ;;  %s935_s28 = smov 24   ;;  %v632_v56 = vld [vmem:[%s1165_s2 + $0x18] sm:$0xff]  ;;  %v631_v57 = vld [vmem:[%s1165_s2 + $0x10] sm:$0xff]  ;;  %v630_v58 = vld [vmem:[%s1165_s2 + $0x8] sm:$0xff] }
 0x1b1   : > { %648 = vmatpush.msrb.mxu0 %v632_v56  ;;  %v629_v59 = vld [vmem:[%s1165_s2] sm:$0xff]  ;;  %vm625_vm8 = vcmask 130048   ;;  %vm627_vm9 = vcmask 195584   ;;  %vm656_vm10 = vcmask 253952  }
 0x1b2   : > { %vm477_vm5 = vcmp.le.s32.totalorder %v476_v32, 5 }
 0x1b3   : > { %v478_v36 = vsel %vm477_vm5, 0.0, %v932_v35  ;;  %579 = vmatpush.msrb.mxu2 %v560_v41  ;;  %649 = vmatpush.msrb.mxu0 %v631_v57 }
 0x1b5   : > { %650 = vmatpush.msrb.mxu0 %v630_v58 }
 0x1b7   : > { %516 = vrot.lane.b32.xlu0 %v479_v26, %s930_s18  ;;  %651 = vmatpush.msrb.mxu0 %v629_v59 }
 0x221   : > { %v483_v27 = vpop.permute.xlu0 %482 }
 0x222   : > { %v486_v28 = vsel %vm485_vm4, %v384_v20, %v483_v27 }
 0x223   : > { %514 = vrot.lane.b32.xlu1 %v486_v28, %s931_s22  ;;  %793 = vmatmul.msk.f32.vlgmr.msra.gmra.mxu2 %vm487_vm3, %v486_v28 }
 0x229   : > { %v517_v29 = vpop.permute.xlu0 %516 }
 0x22a   : > { %794 = vmatpush.xpose.msk.msra.mxu3 %vm487_vm3, %v517_v29 }
 0x295   : > { %v515_v30 = vpop.permute.xlu1 %514 }
 0x296   : > { %795 = vmatmul.msk.f32.vlgmr.msra.gmra.mxu3 %vm487_vm3, %v515_v30 }
 0x2a6   : > { %v511_v37 = vpop.f32.mrf.mxu2 }
 0x319   : > { %v539_v33 = vpop.f32.mrf.mxu3 }
 0x31a   : > { %v543_v34 = vrot.slane %v539_v33, 6 }
 0x31c   : > { %v546_v38 = vsel %vm545_vm6, %v511_v37, %v543_v34 }
 0x31d   : > { %v547_v39 = vadd.f32 %v546_v38, %v478_v36 }
 0x31f   : > { %v549_v40 = vsel %vm548_vm7, %v547_v39, -inf }
 0x320   : > { %550 = vmax.xlane.f32.xlu1 %v549_v40 }
 0x393   : > { %v551_v42 = vpop.xlane.xlu1 %550 }
 0x394   : > { %v552_v43 = vsub.f32 %v547_v39, %v551_v42 }
 0x396   : > { %v553_v44 = vmul.f32 1.442695, %v552_v43 }
 0x398   : > { %852 = vpow2.f32 %v553_v44 }
 0x39e   : > { %v853_v45 = vpop.eup %852 }
 0x39f   : > { %v555_v46 = vsel %vm548_vm7, %v853_v45, 0.0 }
 0x3a0   : > { %556 = vadd.xlane.f32.xlu2 %v555_v46 }
 0x3b8   : > { %586 = vrot.lane.b32.xlu2 %v560_v41, %s930_s18 }
 0x413   : > { %v557_v47 = vpop.xlane.xlu2 %556 }
 0x414   : > { %854 = vrcp.f32 %v557_v47 }
 0x41a   : > { %v855_v48 = vpop.eup %854 }
 0x41b   : > { %v559_v49 = vmul.f32 %v855_v48, %v853_v45  ;;  %v587_v50 = vpop.permute.xlu2 %586 }
 0x41c   : > { %606 = vmatpush.msrb.mxu3 %v587_v50 }
 0x41d   : > { %796 = vmatmul.msk.f32.vlgmr.msrb.gmra.mxu2 %vm487_vm3, %v559_v49  ;;  %v584_v51 = vrot.slane %v559_v49, 2 }
 0x41f   : > { %797 = vmatmul.msk.f32.vlgmr.msrb.gmra.mxu3 %vm487_vm3, %v584_v51 }
 0x4a0   : > { %v581_v52 = vpop.f32.mrf.mxu2 }
 0x4a1   : > { %v612_v53 = vrot.slane %v581_v52, 1 }
 0x4a2   : > { %v608_v54 = vpop.f32.mrf.mxu3 }
 0x4a3   : > { %613 = vrot.lane.b32.xlu0 %v612_v53, %s933_s26  ;;  %v620_v55 = vrot.slane %v608_v54, 1 }
 0x4ab   : > { %617 = vrot.lane.b32.xlu0 %v608_v54, %s934_s21 }
 0x4b3   : > { %621 = vrot.lane.b32.xlu0 %v620_v55, %s935_s28 }
 0x515   : > { %v614_v60 = vpop.permute.xlu0 %613 }
 0x516   : > { %v624_v62 = vsel %vm487_vm3, %v581_v52, %v614_v60 }
 0x51d   : > { %v618_v61 = vpop.permute.xlu0 %617 }
 0x51e   : > { %v626_v63 = vsel %vm625_vm8, %v624_v62, %v618_v61 }
 0x525   : > { %v622_v0 = vpop.permute.xlu0 %621 }
 0x526   : > { %v628_v1 = vsel %vm627_vm9, %v626_v63, %v622_v0 }
 0x527   : > { %798 = vmatmul.msk.f32.vlgmr.msrb.gmra.mxu0 %vm325_vm0, %v628_v1 }
 0x5a4   : > { %v653_v2 = vpop.f32.mrf.mxu0 }
 0x5a5   : > { %657 = vst.msk [vmem:[%s1054_s20] sm:$0x1] %vm656_vm10, %v653_v2 }
 0x5a6   : > { %904 = dma.done.wait [#allocation4 + $0x2], 16 }
 0x5a7   : > { %905 = vsyncadd [#allocation4 + $0x2], 4294967280 }
 0x5a8   : > { %906 = dma.done.wait [#allocation4 + $0x3], 16 }
 0x5a9   : > { %907 = vsyncadd [#allocation4 + $0x3], 4294967280  ;;  %s672_s26 = scalar_lea.hbm %s1171_s8, %s1012_s17  ;;  %s674_s21 = sshll.u32 %s1054_s20, 4  ;;  %s675_s21 = int_to_ptr.vmem [resolvable:$true] %s674_s21 }
 0x5aa   : > { %s676_s28 = sshll.u32 %s672_s26, 4  ;;  %s1182_s29 = sand.u32 1, %s918_s14   ;;  %s677_s28 = int_to_ptr.hbm [resolvable:$true] %s676_s28 }
 0x5ab   : > { %s664_s11 = scalar_lea.sflag [#allocation6], %s1182_s29  ;;  %s870_s0 = sshra.s32 %s677_s28, 4  ;;  %s871_s0 = int_to_ptr.hbm [resolvable:$true] %s870_s0 }
 0x5ac   : > { %s872_s25 = scalar_lea.hbm %s871_s0, 1  ;;  %s876_s12 = scalar_lea.hbm %s1171_s8, 2 }
 0x5ad   : > { %p873_p11 = scmp.ne.s32.totalorder %s871_s0, %s872_s25  ;;  %p877_p0 = scmp.lt.s32.totalorder %s871_s0, %s1171_s8 }
 0x5ae   : > { %p878_p1 = scmp.lt.s32.totalorder %s876_s12, %s872_s25 }
 0x5af   : > { %p874_p12 = pnand %p873_p11, %p1029_p5 }
 0x5b0   : > { %p879_p2 = por %p878_p1, %p877_p0 }
 0x5b1   : > { %p875_p13 = pneg %p874_p12 }
 0x5b3   : > { %p880_p3 = pnand %p879_p2, %p875_p13 }
 0x5b5   : > { %883 = shalt.err (!%p880_p3)
}
 0x5b6   : > { %805 = dma.vmem_to_hbm [thread:$0]  (%p1029_p5), %s675_s21, 16, %s677_s28, %s664_s11  }
 0x5b7 PF: > { %p811_p4 = scmp.ge.s32.totalorder %s926_s16, 2  ;;  %s688_s17 = sand.u32 1, %s914_s13  }
 0x5b8   : > { %s689_s20 = scalar_lea.sflag [#allocation6], %s688_s17 }
 0x5b9   : > { %p808_p7 = pnand %p811_p4, %p1033_p6 }
 0x5bb   : > { %p809_p8 = pneg %p808_p7 }
 0x5bd   : > { %909 = dma.done.wait (%p809_p8), %s689_s20, 16  }
 0x5be   : > { %911 = vsyncadd (%p809_p8), %s689_s20, 4294967280  ;;  %s1183_s22 = sld [smem:[#allocation16_spill]]  ;;  %p21_p9 = scmp.ge.s32.totalorder %s1016_s19, 4  }
 0x5bf   : > { %s1184_s15 = sld [smem:[#allocation17_spill]]  ;;  %s1185_s13 = smov %s918_s14 }
 0x5c0   : > { %s1187_s16 = smov %s1016_s19  ;;  %23 = sbr.rel (!%p21_p9) target bundleno = 5 (0x5), region = 235 }
 0x5c4   : > { %s1186_s14 = smov %s1183_s22 }
 0x5c5   :  { %694 = vsyncpa [#allocation6], 1 }
 0x5c6   :  { %696 = vsyncpa [#allocation6 + $0x1], 1 }
 0x5c7   :  { %697 = vsyncmov [#allocation4] }
 0x5ca   :  { %s698_s16 = vpop.sfrf %697 }
 0x5cb   :  { %p801_p5 = scmp.ne.s32.totalorder %s698_s16, 0 }
 0x5cd   :  { %702 = shalt.err (%p801_p5)  }
 0x5ce   :  { %704 = vsyncmov [#allocation4 + $0x1] }
 0x5d1   :  { %s705_s23 = vpop.sfrf %704 }
 0x5d2   :  { %p802_p6 = scmp.ne.s32.totalorder %s705_s23, 0 }
 0x5d4   :  { %709 = shalt.err (%p802_p6)  }
 0x5d5   :  { %711 = vsyncmov [#allocation4 + $0x2] }
 0x5d8   :  { %s712_s24 = vpop.sfrf %711 }
 0x5d9   :  { %p803_p10 = scmp.ne.s32.totalorder %s712_s24, 0 }
 0x5db   :  { %716 = shalt.err (%p803_p10)  }
 0x5dc   :  { %718 = vsyncmov [#allocation4 + $0x3] }
 0x5df   :  { %s719_s26 = vpop.sfrf %718 }
 0x5e0   :  { %p804_p11 = scmp.ne.s32.totalorder %s719_s26, 0 }
 0x5e2   :  { %723 = shalt.err (%p804_p11)  }

</bundles_post_ra>
